<compile_context>
chip_gen: v5e
topology: v5e:2x2
jax: 0.10.0
libtpu: 0.0.40
codegen_flags: <defaults>
</compile_context>

<pallas_src>
import functools

import jax
import jax.numpy as jnp
from jax import lax
from jax.experimental import pallas as pl
from jax.experimental.pallas import tpu as pltpu

NEG_SLOPE = 0.01
P_MIX = 0.1


# ---------------------------------------------------------------------------
# Kernel
# ---------------------------------------------------------------------------
def _resnet_block_kernel(x_ref, w_ref, b_ref, o_ref):
    # x_ref : (NB, H2, 2*W*C)   two H rows folded per sublane row (lane-dense, 128)
    # w_ref : (4*W*C, 2*W*C)    fused row-pair block-Toeplitz conv weight, already * p
    # b_ref : (1, 2*W*C)        conv bias tiled over the row pair, already * p
    # o_ref : (NB, H2, 2*W*C)
    NB, H2, WC2 = x_ref.shape
    WC = WC2 // 2

    x = x_ref[...]
    # leaky_relu on the conv branch only; the skip uses the pre-activation x.
    act = jnp.where(x > 0, x, NEG_SLOPE * x)

    # Build the im2col slab in vregs (no VMEM scratch).  For output row pair r the
    # conv needs input rows 2r-1, 2r, 2r+1, 2r+2:
    #   d=1 (row 2r)   -> lanes [0:WC]  of act[:, r]
    #   d=2 (row 2r+1) -> lanes [WC:2WC] of act[:, r]
    #   d=0 (row 2r-1) -> lanes [WC:2WC] of act[:, r-1]   (exact zeros at r = 0)
    #   d=3 (row 2r+2) -> lanes [0:WC]  of act[:, r+1]    (exact zeros at r = H2-1)
    a_half = act[:, :, :WC]            # input row 2r
    b_half = act[:, :, WC:]            # input row 2r+1
    zrow = jnp.zeros((NB, 1, WC), act.dtype)
    prev = jnp.concatenate([zrow, b_half[:, :H2 - 1, :]], axis=1)   # row 2r-1
    nxt = jnp.concatenate([a_half[:, 1:, :], zrow], axis=1)         # row 2r+2

    slab = jnp.concatenate([prev, act, nxt], axis=-1)               # (NB, H2, 4*W*C)
    slab = slab.reshape(NB * H2, 4 * WC)

    # Single fused matmul == p * conv2d(leaky_relu(x)) (bias excluded).
    conv = jnp.dot(slab, w_ref[...], preferred_element_type=jnp.float32)  # (NB*H2, 2WC)
    out = conv + b_ref[...] + (1.0 - P_MIX) * x.reshape(NB * H2, WC2)
    o_ref[...] = out.reshape(NB, H2, WC2).astype(o_ref.dtype)


# ---------------------------------------------------------------------------
# Parameter fusion (run once per weight update, NOT per forward call)
# ---------------------------------------------------------------------------
def _fused_conv_weight_rowpair(w_hwio, W, p):
    """Row-pair block-Toeplitz weight Wf ((K+1)*W*C, 2*W*C):

    Wf[d*W*C + jj*C + ci, o*W*C + j*C + co] = p * w_hwio[d - o, jj - j + pad, ci, co]
      for 0 <= d - o < K and 0 <= jj - j + pad < K, zero elsewhere.

    This realizes the kw shifts + zero padding along W (via the eye offsets) and the
    kh structure across the 4 input rows each output row-pair needs, so the whole
    conv is a single (.., 4*W*C) x (4*W*C, 2*W*C) matmul."""
    K = w_hwio.shape[0]
    C = w_hwio.shape[2]
    pad = (K - 1) // 2
    WC = W * C

    # Per-kh width-Toeplitz block (W*C, W*C).
    blk = []
    for kh in range(K):
        acc = jnp.zeros((WC, WC), w_hwio.dtype)
        for kw in range(K):
            S = jnp.eye(W, W, k=pad - kw, dtype=w_hwio.dtype)   # S[jj, j]=1 iff jj=j+kw-pad
            acc = acc + jnp.kron(S, p * w_hwio[kh, kw])
        blk.append(acc)

    wf = jnp.zeros(((K + 1) * WC, 2 * WC), w_hwio.dtype)
    for o in range(2):                     # output row within the pair
        for kh in range(K):
            d = o + kh                     # input-row offset within the 4-row window
            wf = wf.at[d * WC:(d + 1) * WC, o * WC:(o + 1) * WC].set(blk[kh])
    return wf


def fuse_params(w_oihw, bias, W, p=P_MIX):
    """Precompute the fused conv weight and tiled, p-scaled bias (once per update)."""
    K = w_oihw.shape[2]
    assert K == 3 and w_oihw.shape[3] == 3, "kernel fusion assumes 3x3 conv"
    C = bias.shape[0]
    w_hwio = jnp.transpose(w_oihw, (2, 3, 1, 0))
    wf = _fused_conv_weight_rowpair(w_hwio, W, p)              # (4*W*C, 2*W*C)
    b2 = jnp.tile(p * bias, 2 * W).reshape(1, 2 * W * C)       # (1, 2*W*C)
    return wf, b2


# ---------------------------------------------------------------------------
# Pallas entry points
# ---------------------------------------------------------------------------
def _pallas_forward(x_folded, wf, b2, *, nb_grid):
    N, H2, WC2 = x_folded.shape
    KWC = wf.shape[0]

    if nb_grid > 1:
        # v7x: one batch image per TensorCore.
        grid = (N,)
        xspec = pl.BlockSpec((1, H2, WC2), lambda i: (i, 0, 0))
        sem = ("parallel",)
    else:
        # v5e/v6e: single TC -> single grid step, whole problem per step.
        grid = (1,)
        xspec = pl.BlockSpec((N, H2, WC2), lambda i: (0, 0, 0))
        sem = ("arbitrary",)

    return pl.pallas_call(
        _resnet_block_kernel,
        out_shape=jax.ShapeDtypeStruct((N, H2, WC2), x_folded.dtype),
        grid_spec=pltpu.PrefetchScalarGridSpec(
            num_scalar_prefetch=0,
            grid=grid,
            in_specs=[
                xspec,
                pl.BlockSpec((KWC, WC2), lambda i: (0, 0)),   # weight resident
                pl.BlockSpec((1, WC2), lambda i: (0, 0)),     # bias resident
            ],
            out_specs=xspec,
        ),
        compiler_params=pltpu.CompilerParams(dimension_semantics=sem),
    )(x_folded, wf, b2)


@functools.partial(jax.jit, static_argnames=("nb_grid",))
def resnet_block_nchw(x_nchw, wf, b2, nb_grid=1):
    """PyTorch-convention entry point: x (N,C,H,W); wf/b2 from fuse_params."""
    N, C, H, W = x_nchw.shape
    assert H % 2 == 0, "row-pair folding assumes even H"
    # NCHW -> folded lane-dense layout (N, H/2, 2*W*C).  Kept only at the module
    # boundary; callers already in the folded layout can call _pallas_forward.
    x_folded = jnp.transpose(x_nchw, (0, 2, 3, 1)).reshape(N, H // 2, 2 * W * C)
    y_folded = _pallas_forward(x_folded, wf, b2, nb_grid=nb_grid)
    return jnp.transpose(y_folded.reshape(N, H, W, C), (0, 3, 1, 2))


def _batch_grid_for_device(N):
    """Split the grid over batch only on 2-TC chips (v7x); otherwise one step."""
    try:
        kind = jax.devices()[0].device_kind.lower()
    except Exception:
        kind = ""
    return N if "v7" in kind else 1


# ---------------------------------------------------------------------------
# Reference + test
# ---------------------------------------------------------------------------
def _reference_nchw(x_nchw, w_oihw, bias):
    x_nhwc = jnp.transpose(x_nchw, (0, 2, 3, 1)).astype(jnp.float32)
    w_hwio = jnp.transpose(w_oihw, (2, 3, 1, 0)).astype(jnp.float32)
    act = jnp.where(x_nhwc > 0, x_nhwc, NEG_SLOPE * x_nhwc)
    conv = lax.conv_general_dilated(
        act, w_hwio, window_strides=(1, 1), padding="SAME",
        dimension_numbers=("NHWC", "HWIO", "NHWC")) + bias
    out = P_MIX * conv + (1.0 - P_MIX) * x_nhwc
    return jnp.transpose(out, (0, 3, 1, 2))


if __name__ == "__main__":
    # Small shapes consistent with the module: batch=2, channels=4, spatial=16.
    N, C, H, W = 2, 4, 16, 16
    K = 3

    key = jax.random.PRNGKey(0)
    kx, kw_, kb = jax.random.split(key, 3)
    x = jax.random.normal(kx, (N, C, H, W), dtype=jnp.float32)

    # Deterministic parameter init (Conv2d-like uniform(-bound, bound)).
    fan_in = C * K * K
    bound = 1.0 / (fan_in ** 0.5)
    w = jax.random.uniform(kw_, (C, C, K, K), jnp.float32, -bound, bound)
    b = jax.random.uniform(kb, (C,), jnp.float32, -bound, bound)

    # Fuse conv weight / bias once (per weight update), outside the forward path.
    wf, b2 = fuse_params(w, b, W)

    nb_grid = _batch_grid_for_device(N)
    out = resnet_block_nchw(x, wf, b2, nb_grid=nb_grid)
    out = jax.block_until_ready(out)

    ref = _reference_nchw(x, w, b)
    assert out.shape == (N, C, H, W)
    assert jnp.allclose(out, ref, atol=3e-5, rtol=3e-5), float(jnp.max(jnp.abs(out - ref)))

    print("KERNEL_OK")
</pallas_src>

<mosaic_0001>
module attributes {stable_mosaic.version = 11 : i64} {
  func.func @_resnet_block_kernel(%arg0: i32, %arg1: memref<2x8x128xf32, #tpu.memory_space<vmem>>, %arg2: memref<256x128xf32, #tpu.memory_space<vmem>>, %arg3: memref<1x128xf32, #tpu.memory_space<vmem>>, %arg4: memref<2x8x128xf32, #tpu.memory_space<vmem>>) attributes {dimension_semantics = [#tpu.dimension_semantics<arbitrary>], iteration_bounds = array<i64: 1>, scalar_prefetch = 0 : i64, scratch_operands = 0 : i64, tpu.core_type = #tpu.core_type<tc>, window_params = [{pipeline_mode = #tpu.pipeline_mode<synchronous>, transform_indices = @transform_0, window_bounds = array<i64: 2, 8, 128>}, {pipeline_mode = #tpu.pipeline_mode<synchronous>, transform_indices = @transform_1, window_bounds = array<i64: 256, 128>}, {pipeline_mode = #tpu.pipeline_mode<synchronous>, transform_indices = @transform_2, window_bounds = array<i64: 1, 128>}, {pipeline_mode = #tpu.pipeline_mode<synchronous>, transform_indices = @transform_3, window_bounds = array<i64: 2, 8, 128>}]} {
    %c0 = arith.constant 0 : index
    %c0_0 = arith.constant 0 : index
    %c0_1 = arith.constant 0 : index
    %0 = vector.load %arg1[%c0, %c0_0, %c0_1] : memref<2x8x128xf32, #tpu.memory_space<vmem>>, vector<2x8x128xf32>
    %cst = arith.constant 0.000000e+00 : f32
    %1 = vector.broadcast %cst : f32 to vector<2x8x128xf32>
    %2 = arith.cmpf ogt, %0, %1 : vector<2x8x128xf32>
    %cst_2 = arith.constant 0.00999999977 : f32
    %3 = vector.broadcast %cst_2 : f32 to vector<2x8x128xf32>
    %4 = arith.mulf %3, %0 : vector<2x8x128xf32>
    %5 = arith.select %2, %0, %4 : vector<2x8x128xi1>, vector<2x8x128xf32>
    %6 = vector.extract_strided_slice %5 {offsets = [0, 0, 0], sizes = [2, 8, 64], strides = [1, 1, 1]} : vector<2x8x128xf32> to vector<2x8x64xf32>
    %7 = vector.extract_strided_slice %5 {offsets = [0, 0, 64], sizes = [2, 8, 64], strides = [1, 1, 1]} : vector<2x8x128xf32> to vector<2x8x64xf32>
    %cst_3 = arith.constant 0.000000e+00 : f32
    %8 = vector.broadcast %cst_3 : f32 to vector<2x1x64xf32>
    %9 = vector.extract_strided_slice %7 {offsets = [0, 0, 0], sizes = [2, 7, 64], strides = [1, 1, 1]} : vector<2x8x64xf32> to vector<2x7x64xf32>
    %10 = tpu.concatenate %8, %9 in 1 : vector<2x1x64xf32>, vector<2x7x64xf32> -> vector<2x8x64xf32>
    %11 = vector.extract_strided_slice %6 {offsets = [0, 1, 0], sizes = [2, 7, 64], strides = [1, 1, 1]} : vector<2x8x64xf32> to vector<2x7x64xf32>
    %12 = tpu.concatenate %11, %8 in 1 : vector<2x7x64xf32>, vector<2x1x64xf32> -> vector<2x8x64xf32>
    %13 = tpu.concatenate %10, %5, %12 in 2 : vector<2x8x64xf32>, vector<2x8x128xf32>, vector<2x8x64xf32> -> vector<2x8x256xf32>
    %14 = vector.shape_cast %13 : vector<2x8x256xf32> to vector<16x256xf32>
    %c0_4 = arith.constant 0 : index
    %c0_5 = arith.constant 0 : index
    %15 = vector.load %arg2[%c0_4, %c0_5] : memref<256x128xf32, #tpu.memory_space<vmem>>, vector<256x128xf32>
    %cst_6 = arith.constant dense<0.000000e+00> : vector<16x128xf32>
    %16 = tpu.matmul %14, %15, %cst_6 {dimension_numbers = #tpu.dot_dimension_numbers<[1], [0], [0], [1], [0, 0, 1, 1], [], []>} : vector<16x256xf32>, vector<256x128xf32>, vector<16x128xf32> -> vector<16x128xf32>
    %c0_7 = arith.constant 0 : index
    %c0_8 = arith.constant 0 : index
    %17 = vector.load %arg3[%c0_7, %c0_8] : memref<1x128xf32, #tpu.memory_space<vmem>>, vector<1x128xf32>
    %18 = vector.broadcast %17 : vector<1x128xf32> to vector<16x128xf32>
    %19 = arith.addf %16, %18 : vector<16x128xf32>
    %20 = vector.shape_cast %0 : vector<2x8x128xf32> to vector<16x128xf32>
    %cst_9 = arith.constant 0.899999976 : f32
    %21 = vector.broadcast %cst_9 : f32 to vector<16x128xf32>
    %22 = arith.mulf %21, %20 : vector<16x128xf32>
    %23 = arith.addf %19, %22 : vector<16x128xf32>
    %24 = vector.shape_cast %23 : vector<16x128xf32> to vector<2x8x128xf32>
    %c0_10 = arith.constant 0 : index
    %c0_11 = arith.constant 0 : index
    %c0_12 = arith.constant 0 : index
    %25 = vector.load %arg4[%c0_10, %c0_11, %c0_12] : memref<2x8x128xf32, #tpu.memory_space<vmem>>, vector<2x8x128xf32>
    tpu.vector_store %arg4[%c0_10, %c0_11, %c0_12], %24 {strides = array<i32>} : memref<2x8x128xf32, #tpu.memory_space<vmem>>, vector<2x8x128xf32>,
    return
  }
  func.func @transform_0(%arg0: i32) -> (i32, i32, i32) {
    %c0_i32 = arith.constant 0 : i32
    %c0_i32_0 = arith.constant 0 : i32
    %c0_i32_1 = arith.constant 0 : i32
    %c0_i32_2 = arith.constant 0 : i32
    return %c0_i32, %c0_i32_0, %c0_i32_1 : i32, i32, i32
  }
  func.func @transform_1(%arg0: i32) -> (i32, i32) {
    %c0_i32 = arith.constant 0 : i32
    %c0_i32_0 = arith.constant 0 : i32
    %c0_i32_1 = arith.constant 0 : i32
    return %c0_i32, %c0_i32_0 : i32, i32
  }
  func.func @transform_2(%arg0: i32) -> (i32, i32) {
    %c0_i32 = arith.constant 0 : i32
    %c0_i32_0 = arith.constant 0 : i32
    %c0_i32_1 = arith.constant 0 : i32
    return %c0_i32, %c0_i32_0 : i32, i32
  }
  func.func @transform_3(%arg0: i32) -> (i32, i32, i32) {
    %c0_i32 = arith.constant 0 : i32
    %c0_i32_0 = arith.constant 0 : i32
    %c0_i32_1 = arith.constant 0 : i32
    %c0_i32_2 = arith.constant 0 : i32
    return %c0_i32, %c0_i32_0, %c0_i32_1 : i32, i32, i32
  }
}

</mosaic_0001>

<bundles_post_ra>
// kernel: resnet_block_nchw.1
= control target key start
LH: loop header
LB: loop body
LE: loop exit
PB: predicated region body
PF: predicated region fallthrough
CT: control target
= control target key end

     0   :  { %vm39_vm2 = vcmask 1046528   ;;  %s202_s6 = smov 64   ;;  %vm32_vm3 = vcmask 1040384   ;;  %vm56_vm4 = vcmask 523264   ;;  %s348_s0 = inlined_call_operand.vmem [shape: f32[2,8,128], index: 0, kind: input, shape index: {}]   ;;  %s349_s1 = inlined_call_operand.vmem [shape: f32[256,128], index: 1, kind: input, shape index: {}]   ;;  %s350_s2 = inlined_call_operand.vmem [shape: f32[1,128], index: 2, kind: input, shape index: {}]   ;;  %s351_s3 = inlined_call_operand.vmem [shape: f32[2,8,128], index: 3, kind: output, shape index: {}]  }
   0x1   :  { %v226_v0 = vld [vmem:[%s348_s0 + $0x8] sm:$0xff]  ;;  %v231_v1 = vld [vmem:[%s348_s0] sm:$0xff]  ;;  %v76_v2 = vld [vmem:[%s349_s1 + $0x78] sm:$0xff] }
   0x2   :  { %vm17_vm0 = vcmp.gt.f32.partialorder %v226_v0, 0.0  ;;  %v19_v3 = vmul.f32 0.01, %v226_v0  ;;  %vm16_vm1 = vcmp.gt.f32.partialorder %v231_v1, 0.0  ;;  %v18_v4 = vmul.f32 0.01, %v231_v1  ;;  %153 = vmatpush.msra.mxu2 %v76_v2  ;;  %97 = vmatpush.msra.mxu0 %v76_v2 }
   0x3   :  { %v75_v5 = vld [vmem:[%s349_s1 + $0x70] sm:$0xff]  ;;  %v74_v6 = vld [vmem:[%s349_s1 + $0x68] sm:$0xff]  ;;  %v92_v9 = vld [vmem:[%s349_s1 + $0xf8] sm:$0xff] }
   0x4   :  { %v21_v7 = vsel %vm17_vm0, %v226_v0, %v19_v3  ;;  %v20_v8 = vsel %vm16_vm1, %v231_v1, %v18_v4  ;;  %154 = vmatpush.msra.mxu2 %v75_v5  ;;  %v91_v10 = vld [vmem:[%s349_s1 + $0xf0] sm:$0xff]  ;;  %98 = vmatpush.msra.mxu0 %v75_v5  ;;  %v73_v13 = vld [vmem:[%s349_s1 + $0x60] sm:$0xff]  ;;  %v90_v15 = vld [vmem:[%s349_s1 + $0xe8] sm:$0xff]  ;;  %v143_v5 = vmul.f32 0.9, %v231_v1 }
   0x5   :  { %v25_v11 = vrot.slane %v21_v7, 7  ;;  %v35_v12 = vrot.slane %v20_v8, 1  ;;  %169 = vmatpush.msra.mxu3 %v92_v9  ;;  %120 = vmatpush.msra.mxu1 %v92_v9  ;;  %v36_v14 = vrot.slane %v21_v7, 1  ;;  %v72_v18 = vld [vmem:[%s349_s1 + $0x58] sm:$0xff]  ;;  %v89_v20 = vld [vmem:[%s349_s1 + $0xe0] sm:$0xff]  ;;  %v24_v21 = vrot.slane %v20_v8, 7 }
   0x6   :  { %155 = vmatpush.msra.mxu2 %v74_v6  ;;  %99 = vmatpush.msra.mxu0 %v74_v6  ;;  %v71_v22 = vld [vmem:[%s349_s1 + $0x50] sm:$0xff]  ;;  %v88_v24 = vld [vmem:[%s349_s1 + $0xd8] sm:$0xff]  ;;  %v70_v25 = vld [vmem:[%s349_s1 + $0x48] sm:$0xff] }
   0x7   :  { %v186_v16 = vpack.i.bf16 %v21_v7, %v25_v11  ;;  %v40_v17 = vsel %vm39_vm2, %v35_v12, 0.0  ;;  %170 = vmatpush.msra.mxu3 %v91_v10  ;;  %121 = vmatpush.msra.mxu1 %v91_v10  ;;  %v41_v23 = vsel %vm39_vm2, %v36_v14, 0.0  ;;  %v87_v26 = vld [vmem:[%s349_s1 + $0xd0] sm:$0xff]  ;;  %v69_v28 = vld [vmem:[%s349_s1 + $0x40] sm:$0xff]  ;;  %v86_v29 = vld [vmem:[%s349_s1 + $0xc8] sm:$0xff] }
   0x8   :  { %v196_v19 = vpack.i.bf16 %v40_v17, %v20_v8  ;;  %156 = vmatpush.msra.mxu2 %v73_v13  ;;  %100 = vmatpush.msra.mxu0 %v73_v13  ;;  %v191_v27 = vpack.i.bf16 %v24_v21, %v41_v23  ;;  %v68_v30 = vld [vmem:[%s349_s1 + $0x38] sm:$0xff]  ;;  %v85_v31 = vld [vmem:[%s349_s1 + $0xc0] sm:$0xff]  ;;  %v67_v32 = vld [vmem:[%s349_s1 + $0x30] sm:$0xff]  ;;  %v144_v8 = vmul.f32 0.9, %v226_v0 }
   0x9   :  { %187 = vrot.lane.b32.xlu0 %v186_v16, %s202_s6  ;;  %171 = vmatpush.msra.mxu3 %v90_v15  ;;  %v84_v33 = vld [vmem:[%s349_s1 + $0xb8] sm:$0xff]  ;;  %v66_v34 = vld [vmem:[%s349_s1 + $0x28] sm:$0xff]  ;;  %v83_v35 = vld [vmem:[%s349_s1 + $0xb0] sm:$0xff] }
   0xa   :  { %197 = vrot.lane.b32.xlu1 %v196_v19, %s202_s6  ;;  %157 = vmatpush.msra.mxu2 %v72_v18  ;;  %v65_v36 = vld [vmem:[%s349_s1 + $0x20] sm:$0xff]  ;;  %v64_v37 = vld [vmem:[%s349_s1 + $0x18] sm:$0xff]  ;;  %v63_v38 = vld [vmem:[%s349_s1 + $0x10] sm:$0xff] }
   0xb   :  { %172 = vmatpush.msra.mxu3 %v89_v20  ;;  %122 = vmatpush.msra.mxu1 %v90_v15  ;;  %v82_v39 = vld [vmem:[%s349_s1 + $0xa8] sm:$0xff]  ;;  %v81_v41 = vld [vmem:[%s349_s1 + $0xa0] sm:$0xff]  ;;  %v80_v43 = vld [vmem:[%s349_s1 + $0x98] sm:$0xff] }
   0xc   :  { %158 = vmatpush.msra.mxu2 %v71_v22  ;;  %101 = vmatpush.msra.mxu0 %v72_v18  ;;  %v62_v40 = vld [vmem:[%s349_s1 + $0x8] sm:$0xff]  ;;  %v61_v42 = vld [vmem:[%s349_s1] sm:$0xff]  ;;  %v79_v44 = vld [vmem:[%s349_s1 + $0x90] sm:$0xff] }
   0xd   :  { %173 = vmatpush.msra.mxu3 %v88_v24  ;;  %123 = vmatpush.msra.mxu1 %v89_v20  ;;  %v78_v45 = vld [vmem:[%s349_s1 + $0x88] sm:$0xff]  ;;  %v77_v46 = vld [vmem:[%s349_s1 + $0x80] sm:$0xff] }
   0xe   :  { %159 = vmatpush.msra.mxu2 %v70_v25  ;;  %102 = vmatpush.msra.mxu0 %v71_v22  ;;  %v201_v62 = vld [vmem:[%s350_s2] ss:$0 sm:$0xff] }
   0xf   :  { %174 = vmatpush.msra.mxu3 %v87_v26  ;;  %124 = vmatpush.msra.mxu1 %v88_v24 }
  0x10   :  { %160 = vmatpush.msra.mxu2 %v69_v28  ;;  %103 = vmatpush.msra.mxu0 %v70_v25 }
  0x11   :  { %192 = vrot.lane.b32.xlu0 %v191_v27, %s202_s6  ;;  %175 = vmatpush.msra.mxu3 %v86_v29 }
  0x12   :  { %161 = vmatpush.msra.mxu2 %v68_v30  ;;  %125 = vmatpush.msra.mxu1 %v87_v26 }
  0x13   :  { %176 = vmatpush.msra.mxu3 %v85_v31  ;;  %104 = vmatpush.msra.mxu0 %v69_v28 }
  0x14   :  { %162 = vmatpush.msra.mxu2 %v67_v32  ;;  %126 = vmatpush.msra.mxu1 %v86_v29 }
  0x15   :  { %177 = vmatpush.msra.mxu3 %v84_v33  ;;  %105 = vmatpush.msra.mxu0 %v68_v30 }
  0x16   :  { %163 = vmatpush.msra.mxu2 %v66_v34  ;;  %127 = vmatpush.msra.mxu1 %v85_v31 }
  0x17   :  { %178 = vmatpush.msra.mxu3 %v83_v35  ;;  %106 = vmatpush.msra.mxu0 %v67_v32 }
  0x18   :  { %164 = vmatpush.msra.mxu2 %v65_v36  ;;  %128 = vmatpush.msra.mxu1 %v84_v33 }
  0x19   :  { %107 = vmatpush.msra.mxu0 %v66_v34  ;;  %179 = vmatpush.msra.mxu3 %v82_v39 }
  0x1a   :  { %165 = vmatpush.msra.mxu2 %v64_v37  ;;  %129 = vmatpush.msra.mxu1 %v83_v35 }
  0x1b   :  { %108 = vmatpush.msra.mxu0 %v65_v36  ;;  %180 = vmatpush.msra.mxu3 %v81_v41 }
  0x1c   :  { %166 = vmatpush.msra.mxu2 %v63_v38  ;;  %130 = vmatpush.msra.mxu1 %v82_v39 }
  0x1d   :  { %109 = vmatpush.msra.mxu0 %v64_v37  ;;  %181 = vmatpush.msra.mxu3 %v80_v43 }
  0x1e   :  { %167 = vmatpush.msra.mxu2 %v62_v40  ;;  %131 = vmatpush.msra.mxu1 %v81_v41 }
  0x1f   :  { %110 = vmatpush.msra.mxu0 %v63_v38  ;;  %182 = vmatpush.msra.mxu3 %v79_v44 }
  0x20   :  { %168 = vmatpush.msra.mxu2 %v61_v42  ;;  %132 = vmatpush.msra.mxu1 %v80_v43 }
  0x21   :  { %111 = vmatpush.msra.mxu0 %v62_v40  ;;  %183 = vmatpush.msra.mxu3 %v78_v45 }
  0x22   :  { %133 = vmatpush.msra.mxu1 %v79_v44 }
  0x23   :  { %112 = vmatpush.msra.mxu0 %v61_v42  ;;  %184 = vmatpush.msra.mxu3 %v77_v46 }
  0x24   :  { %134 = vmatpush.msra.mxu1 %v78_v45 }
  0x26   :  { %135 = vmatpush.msra.mxu1 %v77_v46 }
  0x7b   :  { %v188_v47 = vpop.permute.xlu0 %187 }
  0x7c   :  { %v190_v48 = vunpack.i.h.bf16 %v188_v47  ;;  %v189_v49 = vunpack.i.l.bf16 %v188_v47  ;;  %v198_v50 = vpop.permute.xlu1 %197 }
  0x7d   :  { %v200_v51 = vunpack.i.h.bf16 %v198_v50  ;;  %v199_v52 = vunpack.i.l.bf16 %v198_v50 }
  0x7e   :  { %v34_v53 = vsel %vm32_vm3, 0.0, %v189_v49 }
  0x7f   :  { %v58_v54 = vsel %vm56_vm4, %v34_v53, %v190_v48  ;;  %v59_v55 = vsel %vm56_vm4, %v199_v52, %v200_v51 }
  0x80   :  { %116 = vmatmul.f32.vlgmr.msra.gmra.mxu2 %v58_v54  ;;  %136 = vmatmul.f32.vlgmr.msra.gmra.mxu1 %v59_v55 }
  0x83   :  { %v193_v56 = vpop.permute.xlu0 %192 }
  0x84   :  { %v195_v57 = vunpack.i.h.bf16 %v193_v56  ;;  %v194_v58 = vunpack.i.l.bf16 %v193_v56 }
  0x86   :  { %v33_v59 = vsel %vm32_vm3, 0.0, %v195_v57  ;;  %v60_v60 = vsel %vm56_vm4, %v190_v48, %v194_v58 }
  0x87   :  { %139 = vmatmul.f32.vlgmr.msra.gmra.mxu3 %v60_v60  ;;  %v57_v61 = vsel %vm56_vm4, %v33_v59, %v199_v52 }
  0x88   :  { %113 = vmatmul.f32.vlgmr.msra.gmra.mxu0 %v57_v61 }
  0xfd   :  { %v137_v2 = vpop.f32.mrf.mxu1 }
 0x103   :  { %v117_v3 = vpop.f32.mrf.mxu2 }
 0x104   :  { %v118_v7 = vadd.f32 %v201_v62, %v117_v3 }
 0x105   :  { %v114_v63 = vpop.f32.mrf.mxu0 }
 0x106   :  { %v115_v4 = vadd.f32 %v201_v62, %v114_v63 }
 0x108   :  { %v138_v6 = vadd.f32 %v137_v2, %v115_v4 }
 0x10a   :  { %v145_v9 = vadd.f32 %v143_v5, %v138_v6  ;;  %v140_v10 = vpop.f32.mrf.mxu3 }
 0x10b   :  { %v141_v11 = vadd.f32 %v140_v10, %v118_v7 }
 0x10c   :  { %147 = vst [vmem:[%s351_s3] sm:$0xff] %v145_v9 }
 0x10d   :  { %v146_v12 = vadd.f32 %v144_v8, %v141_v11 }
 0x10f   :  { %148 = vst [vmem:[%s351_s3 + $0x8] sm:$0xff] %v146_v12 }

</bundles_post_ra>
